<compile_context>
chip_gen: v6e
topology: v6e:2x2x1
jax: 0.10.0
libtpu: 0.0.40
codegen_flags: <defaults>
</compile_context>

<pallas_src>
import functools
import math

import jax
import jax.numpy as jnp
from jax.experimental import pallas as pl
from jax.experimental.pallas import tpu as pltpu


# VMEM budgets re-derived for v7x (64 MiB physical VMEM per TC); also valid
# (conservative) on v5e/v6e which have 128 MiB.
_VMEM_LIMIT_BYTES = 40 * 1024 * 1024   # scoped limit, well under 64 MiB physical
_LN_VMEM_BUDGET = 12 * 1024 * 1024     # LN pipeline streams (double-buffered)
_MM_VMEM_BUDGET = 24 * 1024 * 1024     # matmul pipeline streams (double-buffered)


def _compiler_params(dim_semantics):
    return pltpu.CompilerParams(
        dimension_semantics=dim_semantics,
        vmem_limit_bytes=_VMEM_LIMIT_BYTES,
    )


def _pick_tile(dim, candidates):
    """Largest candidate that evenly divides `dim`, else the full extent."""
    for c in candidates:
        if c <= dim and dim % c == 0:
            return c
    return dim


# ----------------------------------------------------------------------------
# Exact-erf GELU (Abramowitz & Stegun 7.1.26, max abs err 1.5e-7).
# Uses only exp + VPU ops, so it is guaranteed to lower inside Mosaic and runs
# on the EUP/VPU slots that are idle while the MXU streams the matmul.
# ----------------------------------------------------------------------------
_ERF_P = 0.3275911
_ERF_A1 = 0.254829592
_ERF_A2 = -0.284496736
_ERF_A3 = 1.421413741
_ERF_A4 = -1.453152027
_ERF_A5 = 1.061405429
_INV_SQRT2 = 1.0 / math.sqrt(2.0)


def _erf_approx(x):
    sign = jnp.sign(x)
    ax = jnp.abs(x)
    t = 1.0 / (1.0 + _ERF_P * ax)
    poly = t * (_ERF_A1 + t * (_ERF_A2 + t * (_ERF_A3 + t * (_ERF_A4 + t * _ERF_A5))))
    return sign * (1.0 - poly * jnp.exp(-ax * ax))


def _gelu_erf(x):
    return 0.5 * x * (1.0 + _erf_approx(x * _INV_SQRT2))


# ----------------------------------------------------------------------------
# Fused (add +) LayerNorm kernel
# ----------------------------------------------------------------------------
def _ln_stats_apply(x, wb_ref, eps):
    hidden = x.shape[-1]
    s1 = jnp.sum(x, axis=-1, keepdims=True)
    s2 = jnp.sum(x * x, axis=-1, keepdims=True)
    mean = s1 * (1.0 / hidden)
    var = jnp.maximum(s2 * (1.0 / hidden) - mean * mean, 0.0)
    inv = jax.lax.rsqrt(var + eps)          # eps inside the sqrt (TF / BERT style)
    w = wb_ref[0:1, :].astype(jnp.float32)  # (1, hidden)
    b = wb_ref[1:2, :].astype(jnp.float32)  # (1, hidden)
    return (x - mean) * inv * w + b


def _ln_kernel(x_ref, wb_ref, o_ref, *, eps):
    x = x_ref[...].astype(jnp.float32)
    o_ref[...] = _ln_stats_apply(x, wb_ref, eps).astype(o_ref.dtype)


def _add_ln_kernel(x_ref, r_ref, wb_ref, o_ref, *, eps):
    x = x_ref[...].astype(jnp.float32) + r_ref[...].astype(jnp.float32)
    o_ref[...] = _ln_stats_apply(x, wb_ref, eps).astype(o_ref.dtype)


def fused_layer_norm(x, weight, bias, residual=None, eps=1e-12):
    """LayerNorm over the last axis, optionally fused with `x + residual`."""
    orig_shape = x.shape
    hidden = orig_shape[-1]
    rows = 1
    for d in orig_shape[:-1]:
        rows *= d
    x2 = x.reshape(rows, hidden)
    r2 = residual.reshape(rows, hidden) if residual is not None else None
    wb = jnp.stack([weight, bias], axis=0)  # single (2, hidden) stream -> one DMA

    # Row tile: largest divisor of `rows` that keeps the double-buffered pipeline
    # inside the (v7x-sized) budget; 512-1024 rows already hit the HBM roofline.
    n_streams = 3 if residual is not None else 2
    max_tr = max(8, _LN_VMEM_BUDGET // (n_streams * 2 * hidden * 4))
    candidates = [c for c in (1024, 512, 256, 128, 64, 32, 16, 8) if c <= max_tr]

    tr = None
    for c in candidates:
        if rows % c == 0:
            tr = c
            break
    pad = 0
    if tr is None:
        if rows <= max_tr:
            tr = rows
        else:
            # TODO(synk): replace padding with an in-kernel masked ragged tail.
            tr = candidates[0]
            pad = (-rows) % tr
            x2 = jnp.pad(x2, ((0, pad), (0, 0)))
            if r2 is not None:
                r2 = jnp.pad(r2, ((0, pad), (0, 0)))

    n_rows = rows + pad
    # v7x megacore: keep the parallel row axis >= 2 blocks when possible.
    while pad == 0 and n_rows // tr < 2 and tr % 2 == 0 and tr >= 16:
        tr //= 2
    grid = (n_rows // tr,)

    row_spec = pl.BlockSpec((tr, hidden), lambda i: (i, 0))
    wb_spec = pl.BlockSpec((2, hidden), lambda i: (0, 0))

    if residual is None:
        kernel = functools.partial(_ln_kernel, eps=eps)
        in_specs = [row_spec, wb_spec]
        args = (x2, wb)
    else:
        kernel = functools.partial(_add_ln_kernel, eps=eps)
        in_specs = [row_spec, row_spec, wb_spec]
        args = (x2, r2, wb)

    out = pl.pallas_call(
        kernel,
        out_shape=jax.ShapeDtypeStruct((n_rows, hidden), x.dtype),
        grid_spec=pltpu.PrefetchScalarGridSpec(
            num_scalar_prefetch=0,
            grid=grid,
            in_specs=in_specs,
            out_specs=pl.BlockSpec((tr, hidden), lambda i: (i, 0)),
        ),
        compiler_params=_compiler_params(("parallel",)),
    )(*args)

    if pad:
        out = out[:rows]
    return out.reshape(orig_shape)


# ----------------------------------------------------------------------------
# Full-K matmul + bias (+ optional erf-GELU) kernel — every nn.Linear
# ----------------------------------------------------------------------------
def _matmul_bias_kernel(x_ref, w_ref, b_ref, o_ref, *, activation):
    # bf16 MXU inputs, f32 accumulation; bias + activation fused in the epilogue.
    x = x_ref[...].astype(jnp.bfloat16)
    w = w_ref[...].astype(jnp.bfloat16)
    y = jnp.dot(x, w, preferred_element_type=jnp.float32)
    y = y + b_ref[...].astype(jnp.float32)
    if activation == "gelu":
        y = _gelu_erf(y)
    o_ref[...] = y.astype(o_ref.dtype)


def matmul_bias(x, w, b, activation=None):
    """y = act(x @ w + b). x: (M, K) f32, w: (K, N) bf16/f32, b: (N,) f32.

    Whole-K contraction per grid step (no k axis, no accumulator revisits):
    a BERT-scale (K<=3072) bf16 weight slab fits VMEM double-buffered.
    """
    M, K = x.shape
    K2, N = w.shape
    assert K == K2 and b.shape == (N,)
    tn = _pick_tile(N, (512, 256, 128))

    xb = x.dtype.itemsize
    wbytes = w.dtype.itemsize

    def footprint(tm_):
        # double-buffered input/output pipeline streams
        return 2 * (tm_ * K * xb + K * tn * wbytes + tm_ * tn * 4)

    tm = None
    for c in (512, 256, 128, 64, 32, 16, 8):
        if c <= M and M % c == 0 and footprint(c) <= _MM_VMEM_BUDGET:
            tm = c
            break
    if tm is None:
        # TODO(synk): pad/mask ragged M, or re-introduce a k-split for huge K.
        tm = M
    # v7x megacore: keep the parallel M axis >= 2 blocks when possible.
    while M // tm < 2 and tm % 2 == 0 and tm >= 16 and M % tm == 0:
        tm //= 2
    grid = (M // tm, N // tn)

    kernel = functools.partial(_matmul_bias_kernel, activation=activation)
    return pl.pallas_call(
        kernel,
        out_shape=jax.ShapeDtypeStruct((M, N), x.dtype),
        grid_spec=pltpu.PrefetchScalarGridSpec(
            num_scalar_prefetch=0,
            grid=grid,
            in_specs=[
                pl.BlockSpec((tm, K), lambda i, j: (i, 0)),
                pl.BlockSpec((K, tn), lambda i, j: (0, j)),
                pl.BlockSpec((1, tn), lambda i, j: (0, j)),
            ],
            out_specs=pl.BlockSpec((tm, tn), lambda i, j: (i, j)),
        ),
        compiler_params=_compiler_params(("parallel", "parallel")),
    )(x, w, b.reshape(1, N))


# ----------------------------------------------------------------------------
# Multi-head attention reading head slices straight from the fused QKV tensor
# ----------------------------------------------------------------------------
def _attention_kernel(q_ref, k_ref, v_ref, m_ref, o_ref, *, hpb, dh, scale):
    mask = m_ref[0].astype(jnp.float32)            # (1, S) additive key mask
    outs = []
    for h in range(hpb):                           # static unroll over packed heads
        lo, hi = h * dh, (h + 1) * dh
        q = q_ref[0, :, lo:hi].astype(jnp.bfloat16)   # (S, dh)
        k = k_ref[0, :, lo:hi].astype(jnp.bfloat16)
        v = v_ref[0, :, lo:hi].astype(jnp.bfloat16)
        s = jax.lax.dot_general(
            q, k, (((1,), (1,)), ((), ())), preferred_element_type=jnp.float32
        )
        s = s * scale + mask
        m = jnp.max(s, axis=-1, keepdims=True)
        p = jnp.exp(s - m)
        l = jnp.sum(p, axis=-1, keepdims=True)
        # p @ v first, then row-scale by 1/l on the EUP slot (S*dh muls, not S*S divs).
        ctx = jnp.dot(p.astype(jnp.bfloat16), v, preferred_element_type=jnp.float32)
        outs.append(ctx * pl.reciprocal(l, approx=True))
    out = jnp.concatenate(outs, axis=-1) if hpb > 1 else outs[0]
    o_ref[0] = out.astype(o_ref.dtype)             # lane-dense (S, hpb*dh) store


def multi_head_attention(qkv, ext_mask, nh, dh, scale):
    """qkv: (B, S, 3H) fused [q|k|v] projections (heads contiguous within each).
    ext_mask: (B, 1, S) additive mask.  Returns context in (B, S, H) layout —
    no split_heads / merge transposes anywhere."""
    B, S, three_h = qkv.shape
    H = three_h // 3
    assert H == nh * dh

    # Pack heads per grid step so the block lane width (hpb*dh) is >=128.
    hpb = 1
    for c in (4, 2):
        if nh % c == 0 and c * dh <= 256:
            hpb = c
            break
    n_hg = nh // hpb
    blk = (1, S, hpb * dh)

    kernel = functools.partial(_attention_kernel, hpb=hpb, dh=dh, scale=scale)
    return pl.pallas_call(
        kernel,
        out_shape=jax.ShapeDtypeStruct((B, S, H), qkv.dtype),
        grid_spec=pltpu.PrefetchScalarGridSpec(
            num_scalar_prefetch=0,
            grid=(B, n_hg),
            in_specs=[
                pl.BlockSpec(blk, lambda b, hg: (b, 0, hg)),              # Q slice
                pl.BlockSpec(blk, lambda b, hg: (b, 0, n_hg + hg)),       # K slice
                pl.BlockSpec(blk, lambda b, hg: (b, 0, 2 * n_hg + hg)),   # V slice
                pl.BlockSpec((1, 1, S), lambda b, hg: (b, 0, 0)),         # mask
            ],
            out_specs=pl.BlockSpec(blk, lambda b, hg: (b, 0, hg)),
        ),
        compiler_params=_compiler_params(("parallel", "parallel")),
    )(qkv, qkv, qkv, ext_mask)


# ----------------------------------------------------------------------------
# Parameter packing: fuse QKV, cast matmul weights to bf16 (once, at init time)
# ----------------------------------------------------------------------------
def pack_params(params):
    packed = {
        "word_emb": params["word_emb"],
        "pos_emb": params["pos_emb"],
        "type_emb": params["type_emb"],
        "emb_ln_w": params["emb_ln_w"],
        "emb_ln_b": params["emb_ln_b"],
        "layers": [],
    }
    for lp in params["layers"]:
        packed["layers"].append({
            "qkv_w": jnp.concatenate([lp["q_w"], lp["k_w"], lp["v_w"]], axis=1
                                     ).astype(jnp.bfloat16),
            "qkv_b": jnp.concatenate([lp["q_b"], lp["k_b"], lp["v_b"]], axis=0),
            "ao_w": lp["ao_w"].astype(jnp.bfloat16), "ao_b": lp["ao_b"],
            "i_w": lp["i_w"].astype(jnp.bfloat16), "i_b": lp["i_b"],
            "o_w": lp["o_w"].astype(jnp.bfloat16), "o_b": lp["o_b"],
            "ln1_w": lp["ln1_w"], "ln1_b": lp["ln1_b"],
            "ln2_w": lp["ln2_w"], "ln2_b": lp["ln2_b"],
        })
    return packed


# ----------------------------------------------------------------------------
# SyntaxBert forward (Pallas path) and pure-JAX reference
# ----------------------------------------------------------------------------
def syntax_bert_forward(packed, cfg, input_ids, token_type_ids=None, attention_mask=None):
    H = cfg["n_embd"]
    nh = cfg["n_layer"]        # spec: num_attn_heads = config.n_layer
    dh = H // nh
    eps = cfg["eps"]
    B, S = input_ids.shape
    if attention_mask is None:
        attention_mask = jnp.ones_like(input_ids)
    if token_type_ids is None:
        token_type_ids = jnp.zeros_like(input_ids)
    ext_mask = (1.0 - attention_mask.astype(jnp.float32))[:, None, :] * -10000.0  # (B,1,S)

    # Embedding lookups (XLA gather).
    # TODO(synk): replace with a Pallas scalar-prefetch DMA-gather kernel.
    we = jnp.take(packed["word_emb"], input_ids, axis=0)
    pe = jnp.take(packed["pos_emb"], jnp.arange(S, dtype=jnp.int32), axis=0)[None, :, :]
    te = jnp.take(packed["type_emb"], token_type_ids, axis=0)
    emb = we + pe + te
    h2 = fused_layer_norm(
        emb.reshape(B * S, H), packed["emb_ln_w"], packed["emb_ln_b"], eps=eps
    )
    # dropout layers: identity (inference / eval mode)

    scale = 1.0 / math.sqrt(nh)  # spec divides by sqrt(num_attn_heads) == sqrt(n_layer)
    for lp in packed["layers"]:
        # Fused QKV projection: one matmul, h2 read from HBM once.
        qkv = matmul_bias(h2, lp["qkv_w"], lp["qkv_b"])          # (B*S, 3H)
        ctx = multi_head_attention(qkv.reshape(B, S, 3 * H), ext_mask, nh, dh, scale)
        ctx = ctx.reshape(B * S, H)                              # contiguous, free reshape

        attn_dense = matmul_bias(ctx, lp["ao_w"], lp["ao_b"])
        attn_out = fused_layer_norm(attn_dense, lp["ln1_w"], lp["ln1_b"],
                                    residual=h2, eps=eps)

        # Intermediate dense with the exact-erf GELU fused into the matmul epilogue.
        inter = matmul_bias(attn_out, lp["i_w"], lp["i_b"], activation="gelu")
        mlp = matmul_bias(inter, lp["o_w"], lp["o_b"])
        h2 = fused_layer_norm(mlp, lp["ln2_w"], lp["ln2_b"], residual=attn_out, eps=eps)

    return None, h2.reshape(B, S, H)


def reference_forward(params, cfg, input_ids, token_type_ids, attention_mask):
    H = cfg["n_embd"]
    nh = cfg["n_layer"]
    dh = H // nh
    eps = cfg["eps"]
    B, S = input_ids.shape
    ext = (1.0 - attention_mask.astype(jnp.float32))[:, None, None, :] * -10000.0

    def ln(x, w, b):
        u = jnp.mean(x, -1, keepdims=True)
        v = jnp.mean((x - u) ** 2, -1, keepdims=True)
        return (x - u) / jnp.sqrt(v + eps) * w + b

    emb = (
        params["word_emb"][input_ids]
        + params["pos_emb"][jnp.arange(S)][None, :, :]
        + params["type_emb"][token_type_ids]
    )
    h = ln(emb, params["emb_ln_w"], params["emb_ln_b"])

    for lp in params["layers"]:
        x2 = h.reshape(B * S, H)

        def heads(w, b):
            return (x2 @ w + b).reshape(B, S, nh, dh).transpose(0, 2, 1, 3)

        q = heads(lp["q_w"], lp["q_b"])
        k = heads(lp["k_w"], lp["k_b"])
        v = heads(lp["v_w"], lp["v_b"])
        s = jnp.einsum("bhqd,bhkd->bhqk", q, k) / math.sqrt(nh) + ext
        p = jax.nn.softmax(s, axis=-1)
        ctx = jnp.einsum("bhqk,bhkd->bhqd", p, v).transpose(0, 2, 1, 3).reshape(B * S, H)
        attn_out = ln(ctx @ lp["ao_w"] + lp["ao_b"] + x2, lp["ln1_w"], lp["ln1_b"])
        inter = jax.nn.gelu(attn_out @ lp["i_w"] + lp["i_b"], approximate=False)
        h = ln(inter @ lp["o_w"] + lp["o_b"] + attn_out, lp["ln2_w"], lp["ln2_b"]).reshape(B, S, H)

    return h


def init_params(key, cfg):
    H = cfg["n_embd"]
    V = cfg["vocab_size"]
    P = cfg["max_pos"]
    T = cfg["type_vocab_size"]
    L = cfg["n_layer"]
    inter = 4 * H

    def nrm(k, shape, scale=0.02):
        return scale * jax.random.normal(k, shape, dtype=jnp.float32)

    k_emb, k_layers = jax.random.split(key)
    ke = jax.random.split(k_emb, 3)
    params = {
        "word_emb": nrm(ke[0], (V, H)),
        "pos_emb": nrm(ke[1], (P, H)),
        "type_emb": nrm(ke[2], (T, H)),
        "emb_ln_w": jnp.ones((H,), jnp.float32),
        "emb_ln_b": jnp.zeros((H,), jnp.float32),
        "layers": [],
    }
    for kl in jax.random.split(k_layers, L):
        kk = jax.random.split(kl, 16)
        params["layers"].append({
            "q_w": nrm(kk[0], (H, H)), "q_b": nrm(kk[1], (H,)),
            "k_w": nrm(kk[2], (H, H)), "k_b": nrm(kk[3], (H,)),
            "v_w": nrm(kk[4], (H, H)), "v_b": nrm(kk[5], (H,)),
            "ao_w": nrm(kk[6], (H, H)), "ao_b": nrm(kk[7], (H,)),
            "ln1_w": jnp.ones((H,), jnp.float32) + nrm(kk[8], (H,), 0.05),
            "ln1_b": nrm(kk[9], (H,), 0.05),
            "i_w": nrm(kk[10], (H, inter)), "i_b": nrm(kk[11], (inter,)),
            "o_w": nrm(kk[12], (inter, H)), "o_b": nrm(kk[13], (H,)),
            "ln2_w": jnp.ones((H,), jnp.float32) + nrm(kk[14], (H,), 0.05),
            "ln2_b": nrm(kk[15], (H,), 0.05),
        })
    return params


if __name__ == "__main__":
    # Small config consistent with the module: heads = n_layer, head_size = n_embd // n_layer.
    # n_embd kept a multiple of 128 so all stores stay lane-dense.
    cfg = dict(
        vocab_size=512,
        max_pos=64,
        type_vocab_size=2,
        n_embd=128,
        n_layer=2,
        eps=1e-12,
    )
    B, S = 2, 8
    key = jax.random.PRNGKey(0)
    k_param, k_ids, k_ln, k_mm = jax.random.split(key, 4)
    params = init_params(k_param, cfg)
    packed = pack_params(params)

    input_ids = jax.random.randint(k_ids, (B, S), 0, cfg["vocab_size"], dtype=jnp.int32)
    token_type_ids = jnp.concatenate(
        [jnp.zeros((B, S // 2), jnp.int32), jnp.ones((B, S // 2), jnp.int32)], axis=1
    )
    attention_mask = jnp.ones((B, S), jnp.int32).at[1, S - 2:].set(0)

    # --- tight check of the fused LayerNorm kernel alone ---
    xt = jax.random.normal(k_ln, (4, 64, cfg["n_embd"]), dtype=jnp.float32)
    w = jnp.ones((cfg["n_embd"],), jnp.float32) + 0.1 * jax.random.normal(
        jax.random.PRNGKey(1), (cfg["n_embd"],), dtype=jnp.float32
    )
    b = 0.1 * jax.random.normal(jax.random.PRNGKey(2), (cfg["n_embd"],), dtype=jnp.float32)
    ln_out = jax.block_until_ready(fused_layer_norm(xt, w, b, eps=cfg["eps"]))
    u = jnp.mean(xt, -1, keepdims=True)
    s = jnp.mean((xt - u) ** 2, -1, keepdims=True)
    ln_ref = (xt - u) / jnp.sqrt(s + cfg["eps"]) * w + b
    assert jnp.allclose(ln_out, ln_ref, atol=1e-5, rtol=1e-5), "LayerNorm kernel mismatch"

    # --- check of the fused matmul + bias + erf-GELU kernel alone ---
    km1, km2, km3 = jax.random.split(k_mm, 3)
    xm = jax.random.normal(km1, (16, 128), dtype=jnp.float32)
    wm = (0.05 * jax.random.normal(km2, (128, 256), dtype=jnp.float32)).astype(jnp.bfloat16)
    bm = 0.05 * jax.random.normal(km3, (256,), dtype=jnp.float32)
    mm_out = jax.block_until_ready(matmul_bias(xm, wm, bm, activation="gelu"))
    mm_ref = jax.nn.gelu(xm @ wm.astype(jnp.float32) + bm, approximate=False)
    # Tolerance absorbs bf16 MXU-input rounding vs the f32 XLA reference.
    assert jnp.allclose(mm_out, mm_ref, atol=2e-2, rtol=2e-2), "matmul+GELU kernel mismatch"

    # --- full SyntaxBert forward: Pallas kernels vs pure-JAX f32 reference ---
    _, seq_out = syntax_bert_forward(packed, cfg, input_ids, token_type_ids, attention_mask)
    seq_out = jax.block_until_ready(seq_out)
    ref = reference_forward(params, cfg, input_ids, token_type_ids, attention_mask)
    assert seq_out.shape == (B, S, cfg["n_embd"])
    # Tolerance absorbs bf16 weights / bf16 MXU inputs (f32 accumulation) across 2 layers.
    assert jnp.allclose(seq_out, ref, atol=3e-2, rtol=3e-2), "SyntaxBert forward mismatch"

    print("KERNEL_OK")
</pallas_src>

<mosaic_0001>
module attributes {stable_mosaic.version = 11 : i64} {
  func.func @_ln_kernel(%arg0: i32, %arg1: memref<128x128xf32, #tpu.memory_space<vmem>>, %arg2: memref<2x128xf32, #tpu.memory_space<vmem>>, %arg3: memref<128x128xf32, #tpu.memory_space<vmem>>) attributes {dimension_semantics = [#tpu.dimension_semantics<parallel>], iteration_bounds = array<i64: 2>, scalar_prefetch = 0 : i64, scratch_operands = 0 : i64, tpu.core_type = #tpu.core_type<tc>, window_params = [{transform_indices = @transform_0, window_bounds = array<i64: 128, 128>}, {pipeline_mode = #tpu.pipeline_mode<synchronous>, transform_indices = @transform_1, window_bounds = array<i64: 2, 128>}, {transform_indices = @transform_2, window_bounds = array<i64: 128, 128>}]} {
    %c0 = arith.constant 0 : index
    %c0_0 = arith.constant 0 : index
    %0 = vector.load %arg1[%c0, %c0_0] : memref<128x128xf32, #tpu.memory_space<vmem>>, vector<128x128xf32>
    %cst = arith.constant dense<0.000000e+00> : vector<128xf32>
    %1 = vector.multi_reduction <add>, %0, %cst [1] : vector<128x128xf32> to vector<128xf32>
    %2 = vector.shape_cast %1 : vector<128xf32> to vector<128x1xf32>
    %3 = arith.mulf %0, %0 : vector<128x128xf32>
    %cst_1 = arith.constant dense<0.000000e+00> : vector<128xf32>
    %4 = vector.multi_reduction <add>, %3, %cst_1 [1] : vector<128x128xf32> to vector<128xf32>
    %5 = vector.shape_cast %4 : vector<128xf32> to vector<128x1xf32>
    %cst_2 = arith.constant 7.812500e-03 : f32
    %6 = vector.broadcast %cst_2 : f32 to vector<128x1xf32>
    %7 = arith.mulf %2, %6 : vector<128x1xf32>
    %cst_3 = arith.constant 7.812500e-03 : f32
    %8 = vector.broadcast %cst_3 : f32 to vector<128x1xf32>
    %9 = arith.mulf %5, %8 : vector<128x1xf32>
    %10 = arith.mulf %7, %7 : vector<128x1xf32>
    %11 = arith.subf %9, %10 : vector<128x1xf32>
    %cst_4 = arith.constant 0.000000e+00 : f32
    %12 = vector.broadcast %cst_4 : f32 to vector<128x1xf32>
    %13 = arith.maximumf %11, %12 : vector<128x1xf32>
    %cst_5 = arith.constant 9.99999996E-13 : f32
    %14 = vector.broadcast %cst_5 : f32 to vector<128x1xf32>
    %15 = arith.addf %13, %14 : vector<128x1xf32>
    %16 = math.rsqrt %15 : vector<128x1xf32>
    %c0_6 = arith.constant 0 : index
    %c0_7 = arith.constant 0 : index
    %17 = vector.load %arg2[%c0_6, %c0_7] : memref<2x128xf32, #tpu.memory_space<vmem>>, vector<1x128xf32>
    %c1 = arith.constant 1 : index
    %c0_8 = arith.constant 0 : index
    %18 = vector.load %arg2[%c1, %c0_8] : memref<2x128xf32, #tpu.memory_space<vmem>>, vector<1x128xf32>
    %19 = vector.broadcast %7 : vector<128x1xf32> to vector<128x128xf32>
    %20 = arith.subf %0, %19 : vector<128x128xf32>
    %21 = vector.broadcast %16 : vector<128x1xf32> to vector<128x128xf32>
    %22 = arith.mulf %20, %21 : vector<128x128xf32>
    %23 = vector.broadcast %17 : vector<1x128xf32> to vector<128x128xf32>
    %24 = arith.mulf %22, %23 : vector<128x128xf32>
    %25 = vector.broadcast %18 : vector<1x128xf32> to vector<128x128xf32>
    %26 = arith.addf %24, %25 : vector<128x128xf32>
    %c0_9 = arith.constant 0 : index
    %c0_10 = arith.constant 0 : index
    %27 = vector.load %arg3[%c0_9, %c0_10] : memref<128x128xf32, #tpu.memory_space<vmem>>, vector<128x128xf32>
    tpu.vector_store %arg3[%c0_9, %c0_10], %26 {strides = array<i32>} : memref<128x128xf32, #tpu.memory_space<vmem>>, vector<128x128xf32>,
    return
  }
  func.func @transform_0(%arg0: i32) -> (i32, i32) {
    %c0_i32 = arith.constant 0 : i32
    %c0_i32_0 = arith.constant 0 : i32
    return %arg0, %c0_i32 : i32, i32
  }
  func.func @transform_1(%arg0: i32) -> (i32, i32) {
    %c0_i32 = arith.constant 0 : i32
    %c0_i32_0 = arith.constant 0 : i32
    %c0_i32_1 = arith.constant 0 : i32
    return %c0_i32, %c0_i32_0 : i32, i32
  }
  func.func @transform_2(%arg0: i32) -> (i32, i32) {
    %c0_i32 = arith.constant 0 : i32
    %c0_i32_0 = arith.constant 0 : i32
    return %arg0, %c0_i32 : i32, i32
  }
}

</mosaic_0001>

<bundles_post_ra>
// kernel: tpu_custom_call.1
= control target key start
LH: loop header
LB: loop body
LE: loop exit
PB: predicated region body
PF: predicated region fallthrough
CT: control target
= control target key end

     0   :  { %7 = vsyncpa [#allocation3], 0  ;;  %s1298_s0 = inlined_call_operand.hbm [shape: f32[256,128], index: 0, kind: input, shape index: {}]   ;;  %s1299_s1 = inlined_call_operand.hbm [shape: f32[2,128], index: 1, kind: input, shape index: {}]   ;;  %s1300_s2 = inlined_call_operand.hbm [shape: f32[256,128], index: 2, kind: output, shape index: {}]  }
   0x1   :  { %9 = vsyncpa [#allocation3 + $0x1], 0 }
   0x2   :  { %10 = vsyncpa [#allocation6], 0 }
   0x3   :  { %11 = vsyncpa [#allocation4], 0 }
   0x4   :  { %13 = vsyncpa [#allocation4 + $0x1], 0  ;;  %s831_s9 = smov 0   ;;  %s833_s10 = smov 0  }
   0x5   :  { %s835_s11 = smov 0   ;;  %s837_s12 = smov 0  }
   0x6 LB: > { %s852_s13 = sadd.s32 4294967295, %s807_s12   ;;  %s572_s14 = sadd.s32 4294967294, %s807_s12   ;;  %s807_s12 = sphi %s837_s12, %s1323_s12   ;;  %s803_s11 = sphi %s835_s11, %s1322_s11   ;;  %s799_s10 = sphi %s833_s10, %s1321_s10   ;;  %s795_s9 = sphi %s831_s9, %s1320_s9  }
   0x7   : > { %s856_s15 = sadd.s32 1, %s807_s12   ;;  %s26_s16 = sadd.s32 1, %s803_s11 }
   0x8   : > { %s23_s17 = ssub.s32 %s807_s12, %s856_s15  ;;  %p33_p0 = scmp.ne.s32.totalorder %s803_s11, %s799_s10 }
   0x9   : > { %p24_p1 = scmp.eq.s32.totalorder %s23_s17, 0  ;;  %p34_p2 = scmp.eq.s32.totalorder %s807_s12, 0 }
   0xa   : > { %p39_p3 = scmp.ne.s32.totalorder %s799_s10, %s795_s9  ;;  %p1301_p4 = scmp.eq.s32.totalorder %s852_s13, 0 }
   0xb   : > { %s868_s18 = scalar_select %p24_p1, %s803_s11, %s26_s16  }
   0xc   : > { %p870_p5 = por %p34_p2, %p33_p0  ;;  %p876_p6 = por %p1301_p4, %p39_p3 }
   0xd   : > { %p84_p7 = scmp.eq.s32.totalorder %s852_s13, 1  ;;  %p90_p8 = scmp.eq.s32.totalorder %s572_s14, 1 }
   0xe   : > { %s1306_s20 = scalar_select %p876_p6, 1, 0 }
   0xf   : > { %p573_p9 = scmp.ge.s32.totalorder %s807_s12, 1  ;;  %p97_p10 = scmp.lt.s32.totalorder %s807_s12, 3 }
  0x10   : > { %p883_p11 = por %p84_p7, %p33_p0  ;;  %p887_p12 = por %p90_p8, %p39_p3 }
  0x11   : > { %p891_p13 = pnand %p573_p9, %p97_p10  ;;  %s809_s24 = smov [#allocation5]  }
  0x12   : > { %s1307_s21 = scalar_select %p883_p11, 1, 0 }
  0x13   : > { %s1308_s22 = scalar_select %p887_p12, 1, 0 }
  0x14   : > { %s1309_s23 = scalar_select %p891_p13, 1, 0 }
  0x15   : > { %p600_p2 = pneg %p891_p13  ;;  %s110_s25 = sshll.u32 %s809_s24, 4  ;;  %s111_s25 = int_to_ptr.vmem [resolvable:$true] %s110_s25 }
  0x16   : > { %p613_p4 = scmp.lt.s32.totalorder %s807_s12, 2  ;;  %p1310_p0 = scmp.eq.s32.totalorder %s852_s13, 0 }
  0x17   : > { %s121_s27 = sand.u32 1, %s803_s11   ;;  %s696_s30 = scalar_lea.vmem %s111_s25, 32 }
  0x18   : > { %p901_p7 = pnand %p600_p2, %p1310_p0  ;;  %p908_p3 = pnand %p613_p4, %p870_p5 }
  0x19   : > { %s576_s29 = sshll.u32 %s121_s27, 7  ;;  %p697_p9 = scmp.ne.s32.totalorder %s111_s25, %s696_s30 }
  0x1a   : > { %p687_p8 = pneg %p901_p7  ;;  %p704_p12 = scmp.lt.s32.totalorder %s111_s25, %s111_s25 }
  0x1b   : > { %p705_p11 = scmp.lt.s32.totalorder %s696_s30, %s696_s30 }
  0x1c   : > { %p699_p10 = pnand %p697_p9, %p687_p8 }
  0x1d   : > { %p706_p2 = por %p705_p11, %p704_p12 }
  0x1e   : > { %p700_p1 = pneg %p699_p10 }
  0x20   : > { %p707_p0 = pnand %p706_p2, %p700_p1 }
  0x22   : > { %710 = shalt.err (!%p707_p0)
}
  0x23   : > { %603 = dma.hbm_to_vmem [thread:$0]  (!%p901_p7), %s1299_s1, 32, %s111_s25, [#allocation6]  }
  0x24   : > { %s590_s5 = sshll.u32 %s807_s12, 11  ;;  %s125_s6 = scalar_lea.vmem [#allocation2], %s576_s29 }
  0x25   : > { %s132_s7 = sshll.u32 %s125_s6, 4  ;;  %s923_s16 = scalar_lea.hbm %s1298_s0, %s590_s5  ;;  %s925_s7 = int_to_ptr.vmem [resolvable:$true] %s132_s7 }
  0x26   : > { %s927_s17 = scalar_lea.sflag [#allocation3], %s121_s27  ;;  %s711_s19 = scalar_lea.hbm %s923_s16, 2048 }
  0x27   : > { %p712_p4 = scmp.ne.s32.totalorder %s923_s16, %s711_s19  ;;  %p713_p5 = pneg %p908_p3 }
  0x28   : > { %s716_s26 = scalar_lea.hbm %s1298_s0, 4096  ;;  %p717_p1 = scmp.lt.s32.totalorder %s923_s16, %s1298_s0 }
  0x29   : > { %p714_p11 = pnand %p713_p5, %p712_p4  ;;  %p718_p7 = scmp.lt.s32.totalorder %s716_s26, %s711_s19 }
  0x2b   : > { %p715_p12 = pneg %p714_p11  ;;  %p719_p8 = por %p718_p7, %p717_p1 }
  0x2d   : > { %p720_p9 = pnand %p719_p8, %p715_p12 }
  0x2f   : > { %723 = shalt.err (!%p720_p9)
}
  0x30   : > { %s724_s27 = scalar_lea.vmem %s925_s7, 2048  ;;  %s810_s3 = smov [#allocation2]  }
  0x31   : > { %p725_p10 = scmp.ne.s32.totalorder %s925_s7, %s724_s27  ;;  %s729_s4 = sshll.u32 %s810_s3, 4  ;;  %s730_s4 = int_to_ptr.vmem [resolvable:$false] %s729_s4 }
  0x32   : > { %s731_s5 = scalar_lea.vmem %s730_s4, 4096  ;;  %p732_p4 = scmp.lt.s32.totalorder %s925_s7, %s730_s4 }
  0x33   : > { %p727_p2 = pnand %p725_p10, %p713_p5  ;;  %p733_p11 = scmp.lt.s32.totalorder %s731_s5, %s724_s27 }
  0x35   : > { %p728_p0 = pneg %p727_p2  ;;  %p734_p6 = por %p733_p11, %p732_p4 }
  0x37   : > { %p735_p13 = pnand %p734_p6, %p728_p0 }
  0x39   : > { %738 = shalt.err (!%p735_p13)
}
  0x3a   : > { %s811_s6 = smov 128   ;;  %s812_s8 = smov 8  }
  0x3b   : > { %607 = dma.hbm_to_vmem [thread:$0]  (!%p908_p3), %s923_s16, 2048, %s925_s7, %s927_s17, %s811_s6, %s811_s6, %s812_s8  }
  0x3c   : > { %p1313_p5 = scmp.ne.s32.totalorder %s1309_s23, 0 }
  0x3d   : > { %s951_s14 = sand.u32 (!%p1313_p5), 1, %s799_s10   ;;  %p1314_p6 = scmp.ne.s32.totalorder (!%p1313_p5), %s1306_s20, 0 }
  0x3e   : > { %144 = sbr.rel (%p1313_p5) target bundleno = 313 (0x139), region = 28  ;;  %s580_s19 = sshll.u32 (!%p1313_p5), %s951_s14, 7 }
  0x3f   : > { %s147_s24 = scalar_lea.sflag (!%p1313_p5), [#allocation3], %s951_s14  ;;  %s957_s25 = scalar_lea.vmem (!%p1313_p5), [#allocation2], %s580_s19 }
  0x43   : > { %782 = dma.done.wait (%p1314_p6), %s147_s24, 2048  }
  0x44   : > { %784 = vsyncadd (%p1314_p6), %s147_s24, 4294965248  ;;  %p1315_p13 = scmp.eq.s32.totalorder %s852_s13, 0 }
  0x46   : > { %786 = dma.done.wait (%p1315_p13), [#allocation6], 32   ;;  %p1316_p3 = pmov %p1315_p13 }
  0x47   : > { %v968_v0 = vld [vmem:[%s957_s25 + $0x10] sm:$0xff]  ;;  %v971_v1 = vld [vmem:[%s957_s25] sm:$0xff]  ;;  %v976_v2 = vld [vmem:[%s957_s25 + $0x18] sm:$0xff]  ;;  %s1176_s20 = scalar_lea.vmem [#allocation7], %s580_s19  ;;  %s591_s23 = sshll.u32 %s852_s13, 11 }
  0x48   : > { %788 = vsyncadd (%p1316_p3), [#allocation6], 4294967264  ;;  %197 = vadd.xlane.f32.xlu1 %v968_v0  ;;  %193 = vadd.xlane.f32.xlu0 %v971_v1  ;;  %v979_v3 = vld [vmem:[%s957_s25 + $0x8] sm:$0xff]  ;;  %v987_v5 = vld [vmem:[%s957_s25 + $0x20] sm:$0xff]  ;;  %v225_v17 = vmul.f32 %v971_v1, %v971_v1  ;;  %v228_v18 = vmul.f32 %v976_v2, %v976_v2  ;;  %v227_v19 = vmul.f32 %v968_v0, %v968_v0  ;;  %s489_s28 = sshll.u32 %s1176_s20, 4  ;;  %s1250_s17 = scalar_lea.hbm %s1300_s2, %s591_s23  ;;  %s1252_s28 = int_to_ptr.vmem [resolvable:$true] %s489_s28 }
  0x49   : > { %v984_v4 = vld [vmem:[%s957_s25 + $0x28] sm:$0xff]  ;;  %v992_v6 = vld [vmem:[%s957_s25 + $0x38] sm:$0xff]  ;;  %v995_v7 = vld [vmem:[%s957_s25 + $0x30] sm:$0xff]  ;;  %v226_v16 = vmul.f32 %v979_v3, %v979_v3  ;;  %v229_v21 = vmul.f32 %v987_v5, %v987_v5  ;;  %s476_s13 = scalar_lea.sflag [#allocation4], %s951_s14  ;;  %s739_s26 = scalar_lea.vmem %s1252_s28, 2048 }
  0x4a   : > { %v1000_v8 = vld [vmem:[%s957_s25 + $0x48] sm:$0xff]  ;;  %v1003_v9 = vld [vmem:[%s957_s25 + $0x40] sm:$0xff]  ;;  %v1008_v10 = vld [vmem:[%s957_s25 + $0x58] sm:$0xff]  ;;  %v230_v20 = vmul.f32 %v984_v4, %v984_v4  ;;  %v232_v22 = vmul.f32 %v992_v6, %v992_v6  ;;  %v231_v23 = vmul.f32 %v995_v7, %v995_v7  ;;  %p740_p12 = scmp.ne.s32.totalorder %s1252_s28, %s739_s26  ;;  %p1317_p1 = scmp.ne.s32.totalorder %s1307_s21, 0 }
  0x4b   : > { %v1011_v11 = vld [vmem:[%s957_s25 + $0x50] sm:$0xff]  ;;  %v1016_v12 = vld [vmem:[%s957_s25 + $0x68] sm:$0xff]  ;;  %v1019_v13 = vld [vmem:[%s957_s25 + $0x60] sm:$0xff]  ;;  %v234_v24 = vmul.f32 %v1000_v8, %v1000_v8  ;;  %v233_v25 = vmul.f32 %v1003_v9, %v1003_v9  ;;  %v236_v26 = vmul.f32 %v1008_v10, %v1008_v10  ;;  %s813_s29 = smov [#allocation7]  }
  0x4c   : > { %199 = vadd.xlane.f32.xlu1 %v976_v2  ;;  %195 = vadd.xlane.f32.xlu0 %v979_v3  ;;  %v1024_v14 = vld [vmem:[%s957_s25 + $0x78] sm:$0xff]  ;;  %v1027_v15 = vld [vmem:[%s957_s25 + $0x70] sm:$0xff]  ;;  %v235_v27 = vmul.f32 %v1011_v11, %v1011_v11  ;;  %v238_v28 = vmul.f32 %v1016_v12, %v1016_v12  ;;  %v237_v29 = vmul.f32 %v1019_v13, %v1019_v13  ;;  %p741_p7 = pnand %p740_p12, %p1317_p1  ;;  %s743_s30 = sshll.u32 %s813_s29, 4  ;;  %s744_s30 = int_to_ptr.vmem [resolvable:$false] %s743_s30 }
  0x4d   : > { %v240_v30 = vmul.f32 %v1024_v14, %v1024_v14  ;;  %v239_v31 = vmul.f32 %v1027_v15, %v1027_v15  ;;  %s745_s27 = scalar_lea.vmem %s744_s30, 4096  ;;  %p746_p9 = scmp.lt.s32.totalorder %s1252_s28, %s744_s30 }
  0x4e   : > { %p742_p8 = pneg %p741_p7  ;;  %p747_p10 = scmp.lt.s32.totalorder %s745_s27, %s739_s26 }
  0x50   : > { %203 = vadd.xlane.f32.xlu1 %v984_v4  ;;  %201 = vadd.xlane.f32.xlu0 %v987_v5  ;;  %p748_p2 = por %p747_p10, %p746_p9 }
  0x52   : > { %p749_p0 = pnand %p748_p2, %p742_p8 }
  0x54   : > { %207 = vadd.xlane.f32.xlu1 %v992_v6  ;;  %205 = vadd.xlane.f32.xlu0 %v995_v7 }
  0x58   : > { %211 = vadd.xlane.f32.xlu1 %v1000_v8  ;;  %209 = vadd.xlane.f32.xlu0 %v1003_v9 }
  0x5c   : > { %215 = vadd.xlane.f32.xlu1 %v1008_v10  ;;  %213 = vadd.xlane.f32.xlu0 %v1011_v11 }
  0x60   : > { %219 = vadd.xlane.f32.xlu1 %v1016_v12  ;;  %217 = vadd.xlane.f32.xlu0 %v1019_v13 }
  0x64   : > { %223 = vadd.xlane.f32.xlu1 %v1024_v14  ;;  %221 = vadd.xlane.f32.xlu0 %v1027_v15 }
  0x68   : > { %243 = vadd.xlane.f32.xlu1 %v226_v16  ;;  %241 = vadd.xlane.f32.xlu0 %v225_v17 }
  0x6c   : > { %247 = vadd.xlane.f32.xlu1 %v228_v18  ;;  %245 = vadd.xlane.f32.xlu0 %v227_v19 }
  0x70   : > { %251 = vadd.xlane.f32.xlu1 %v230_v20  ;;  %249 = vadd.xlane.f32.xlu0 %v229_v21 }
  0x74   : > { %255 = vadd.xlane.f32.xlu1 %v232_v22  ;;  %253 = vadd.xlane.f32.xlu0 %v231_v23 }
  0x78   : > { %259 = vadd.xlane.f32.xlu1 %v234_v24  ;;  %257 = vadd.xlane.f32.xlu0 %v233_v25 }
  0x7c   : > { %263 = vadd.xlane.f32.xlu1 %v236_v26  ;;  %261 = vadd.xlane.f32.xlu0 %v235_v27 }
  0x80   : > { %267 = vadd.xlane.f32.xlu1 %v238_v28  ;;  %265 = vadd.xlane.f32.xlu0 %v237_v29 }
  0x84   : > { %271 = vadd.xlane.f32.xlu1 %v240_v30  ;;  %269 = vadd.xlane.f32.xlu0 %v239_v31 }
  0xd1   : > { %v198_v32 = vpop.xlane.xlu1 %197  ;;  %v194_v33 = vpop.xlane.xlu0 %193 }
  0xd2   : > { %v1075_v48 = vmul.f32 0.0078125, %v194_v33  ;;  %v1079_v50 = vmul.f32 0.0078125, %v198_v32 }
  0xd4   : > { %v305_v54 = vmul.f32 %v1075_v48, %v1075_v48  ;;  %v307_v60 = vmul.f32 %v1079_v50, %v1079_v50  ;;  %v389_v21 = vsub.f32 %v968_v0, %v1079_v50  ;;  %v387_v28 = vsub.f32 %v971_v1, %v1075_v48 }
  0xd5   : > { %v200_v34 = vpop.xlane.xlu1 %199  ;;  %v196_v35 = vpop.xlane.xlu0 %195 }
  0xd6   : > { %v1077_v49 = vmul.f32 0.0078125, %v196_v35  ;;  %v1081_v51 = vmul.f32 0.0078125, %v200_v34 }
  0xd8   : > { %v306_v55 = vmul.f32 %v1077_v49, %v1077_v49  ;;  %v308_v61 = vmul.f32 %v1081_v51, %v1081_v51  ;;  %v390_v29 = vsub.f32 %v976_v2, %v1081_v51 }
  0xd9   : > { %v204_v36 = vpop.xlane.xlu1 %203  ;;  %v202_v37 = vpop.xlane.xlu0 %201 }
  0xda   : > { %v1091_v62 = vmul.f32 0.0078125, %v204_v36  ;;  %v1095_v22 = vmul.f32 0.0078125, %v202_v37  ;;  %v388_v37 = vsub.f32 %v979_v3, %v1077_v49 }
  0xdc   : > { %v310_v30 = vmul.f32 %v1091_v62, %v1091_v62 }
  0xdd   : > { %v208_v38 = vpop.xlane.xlu1 %207  ;;  %v206_v39 = vpop.xlane.xlu0 %205 }
  0xde   : > { %v1097_v23 = vmul.f32 0.0078125, %v208_v38  ;;  %v1105_v31 = vmul.f32 0.0078125, %v206_v39  ;;  %v309_v38 = vmul.f32 %v1095_v22, %v1095_v22 }
  0xe1   : > { %v212_v40 = vpop.xlane.xlu1 %211  ;;  %v210_v41 = vpop.xlane.xlu0 %209 }
  0xe5   : > { %v1063_v42 = vpop.xlane.xlu1 %215  ;;  %v1065_v43 = vpop.xlane.xlu0 %213 }
  0xe9   : > { %v1067_v44 = vpop.xlane.xlu1 %219  ;;  %v1069_v45 = vpop.xlane.xlu0 %217 }
  0xed   : > { %v1071_v46 = vpop.xlane.xlu1 %223  ;;  %v1073_v47 = vpop.xlane.xlu0 %221 }
  0xf1   : > { %v244_v52 = vpop.xlane.xlu1 %243  ;;  %v242_v53 = vpop.xlane.xlu0 %241 }
  0xf2   : > { %v290_v56 = vmul.f32 0.0078125, %v244_v52  ;;  %v289_v57 = vmul.f32 0.0078125, %v242_v53  ;;  %v312_v53 = vmul.f32 %v1097_v23, %v1097_v23 }
  0xf4   : > { %v322_v58 = vsub.f32 %v290_v56, %v306_v55  ;;  %v321_v59 = vsub.f32 %v289_v57, %v305_v54  ;;  %v311_v56 = vmul.f32 %v1105_v31, %v1105_v31  ;;  %v1115_v57 = vmul.f32 0.0078125, %v212_v40 }
  0xf5   : > { %v248_v63 = vpop.xlane.xlu1 %247  ;;  %v246_v16 = vpop.xlane.xlu0 %245  ;;  %v1124_v40 = vmul.f32 0.0078125, %v1063_v42 }
  0xf6   : > { %v338_v17 = vmax.f32 %v322_v58, 0.0  ;;  %v337_v18 = vmax.f32 %v321_v59, 0.0  ;;  %v292_v19 = vmul.f32 0.0078125, %v248_v63  ;;  %v291_v20 = vmul.f32 0.0078125, %v246_v16 }
  0xf7   : > { %v1117_v58 = vmul.f32 0.0078125, %v210_v41  ;;  %v392_v16 = vsub.f32 %v984_v4, %v1091_v62 }
  0xf8   : > { %v354_v24 = vadd.f32 1e-12, %v338_v17  ;;  %v353_v25 = vadd.f32 1e-12, %v337_v18  ;;  %v324_v26 = vsub.f32 %v292_v19, %v308_v61  ;;  %v323_v27 = vsub.f32 %v291_v20, %v307_v60 }
  0xf9   : > { %v252_v32 = vpop.xlane.xlu1 %251  ;;  %v250_v33 = vpop.xlane.xlu0 %249  ;;  %v391_v17 = vsub.f32 %v987_v5, %v1095_v22 }
  0xfa   : > { %653 = vrsqrt.f32 %v354_v24  ;;  %v340_v34 = vmax.f32 %v324_v26, 0.0  ;;  %v339_v35 = vmax.f32 %v323_v27, 0.0  ;;  %v294_v36 = vmul.f32 0.0078125, %v252_v32 }
  0xfb   : > { %655 = vrsqrt.f32 %v353_v25  ;;  %v293_v52 = vmul.f32 0.0078125, %v250_v33  ;;  %v314_v24 = vmul.f32 %v1115_v57, %v1115_v57  ;;  %v313_v25 = vmul.f32 %v1117_v58, %v1117_v58 }
  0xfc   : > { %v356_v54 = vadd.f32 1e-12, %v340_v34  ;;  %v355_v39 = vadd.f32 1e-12, %v339_v35  ;;  %v326_v55 = vsub.f32 %v294_v36, %v310_v30  ;;  %v1131_v26 = vmul.f32 0.0078125, %v1065_v43 }
  0xfd   : > { %v325_v59 = vsub.f32 %v293_v52, %v309_v38  ;;  %v256_v3 = vpop.xlane.xlu1 %255  ;;  %v254_v49 = vpop.xlane.xlu0 %253  ;;  %v1134_v35 = vmul.f32 0.0078125, %v1067_v44  ;;  %v1137_v36 = vmul.f32 0.0078125, %v1069_v45  ;;  %v316_v52 = vmul.f32 %v1124_v40, %v1124_v40 }
  0xfe   : > { %657 = vrsqrt.f32 %v356_v54  ;;  %v342_v60 = vmax.f32 %v326_v55, 0.0  ;;  %v296_v61 = vmul.f32 0.0078125, %v256_v3  ;;  %v295_v63 = vmul.f32 0.0078125, %v254_v49 }
  0xff   : > { %659 = vrsqrt.f32 %v355_v39  ;;  %v341_v18 = vmax.f32 %v325_v59, 0.0  ;;  %v315_v39 = vmul.f32 %v1131_v26, %v1131_v26  ;;  %v1144_v55 = vmul.f32 0.0078125, %v1071_v46 }
 0x100   : > { %v358_v41 = vadd.f32 1e-12, %v342_v60  ;;  %v328_v19 = vsub.f32 %v296_v61, %v312_v53  ;;  %v327_v20 = vsub.f32 %v295_v63, %v311_v56  ;;  %v1147_v44 = vmul.f32 0.0078125, %v1073_v47 }
 0x101   : > { %v357_v27 = vadd.f32 1e-12, %v341_v18  ;;  %v260_v30 = vpop.xlane.xlu1 %259  ;;  %v258_v32 = vpop.xlane.xlu0 %257  ;;  %v318_v63 = vmul.f32 %v1134_v35, %v1134_v35  ;;  %v317_v18 = vmul.f32 %v1137_v36, %v1137_v36 }
 0x102   : > { %661 = vrsqrt.f32 %v358_v41  ;;  %v344_v33 = vmax.f32 %v328_v19, 0.0  ;;  %v343_v34 = vmax.f32 %v327_v20, 0.0  ;;  %v298_v42 = vmul.f32 0.0078125, %v260_v30  ;;  %v1153_v41 = vld [vmem:[#allocation5] ss:$0 sm:$0xff] }
 0x103   : > { %663 = vrsqrt.f32 %v357_v27  ;;  %v297_v38 = vmul.f32 0.0078125, %v258_v32  ;;  %v320_v27 = vmul.f32 %v1144_v55, %v1144_v55  ;;  %v319_v30 = vmul.f32 %v1147_v44, %v1147_v44  ;;  %v1159_v32 = vld [vmem:[#allocation5 + $0x1] ss:$0 sm:$0xff] }
 0x104   : > { %v360_v43 = vadd.f32 1e-12, %v344_v33  ;;  %v359_v53 = vadd.f32 1e-12, %v343_v34  ;;  %v330_v54 = vsub.f32 %v298_v42, %v314_v24 }
 0x105   : > { %v329_v56 = vsub.f32 %v297_v38, %v313_v25  ;;  %v264_v45 = vpop.xlane.xlu1 %263  ;;  %v262_v59 = vpop.xlane.xlu0 %261 }
 0x106   : > { %665 = vrsqrt.f32 %v360_v43  ;;  %v346_v3 = vmax.f32 %v330_v54, 0.0  ;;  %v300_v49 = vmul.f32 0.0078125, %v264_v45  ;;  %v299_v60 = vmul.f32 0.0078125, %v262_v59 }
 0x107   : > { %v654_v61 = vpop.eup %653  ;;  %667 = vrsqrt.f32 %v359_v53  ;;  %v345_v46 = vmax.f32 %v329_v56, 0.0 }
 0x108   : > { %v656_v47 = vpop.eup %655  ;;  %v404_v19 = vmul.f32 %v654_v61, %v388_v37  ;;  %v362_v20 = vadd.f32 1e-12, %v346_v3  ;;  %v332_v24 = vsub.f32 %v300_v49, %v316_v52  ;;  %v331_v25 = vsub.f32 %v299_v60, %v315_v39 }
 0x109   : > { %v403_v33 = vmul.f32 %v656_v47, %v387_v28  ;;  %v361_v34 = vadd.f32 1e-12, %v345_v46  ;;  %v268_v42 = vpop.xlane.xlu1 %267  ;;  %v266_v38 = vpop.xlane.xlu0 %265 }
 0x10a   : > { %v424_v37 = vmul.f32 %v1153_v41, %v404_v19  ;;  %669 = vrsqrt.f32 %v362_v20  ;;  %v348_v52 = vmax.f32 %v332_v24, 0.0  ;;  %v347_v43 = vmax.f32 %v331_v25, 0.0 }
 0x10b   : > { %v658_v53 = vpop.eup %657  ;;  %v423_v54 = vmul.f32 %v1153_v41, %v403_v33  ;;  %671 = vrsqrt.f32 %v361_v34  ;;  %v302_v39 = vmul.f32 0.0078125, %v268_v42  ;;  %v301_v56 = vmul.f32 0.0078125, %v266_v38 }
 0x10c   : > { %v660_v45 = vpop.eup %659  ;;  %v444_v59 = vadd.f32 %v1159_v32, %v424_v37  ;;  %v406_v1 = vmul.f32 %v658_v53, %v390_v29  ;;  %v364_v48 = vadd.f32 1e-12, %v348_v52  ;;  %v363_v28 = vadd.f32 1e-12, %v347_v43 }
 0x10d   : > { %v443_v3 = vadd.f32 %v1159_v32, %v423_v54  ;;  %v405_v49 = vmul.f32 %v660_v45, %v389_v21  ;;  %v334_v60 = vsub.f32 %v302_v39, %v318_v63  ;;  %v333_v61 = vsub.f32 %v301_v56, %v317_v18  ;;  %v272_v46 = vpop.xlane.xlu1 %271  ;;  %v270_v47 = vpop.xlane.xlu0 %269 }
 0x10e   : > { %460 = vst [vmem:[%s1176_s20 + $0x8] sm:$0xff] %v444_v59  ;;  %v426_v2 = vmul.f32 %v1153_v41, %v406_v1  ;;  %673 = vrsqrt.f32 %v364_v48  ;;  %v304_v51 = vmul.f32 0.0078125, %v272_v46  ;;  %v303_v29 = vmul.f32 0.0078125, %v270_v47 }
 0x10f   : > { %v662_v19 = vpop.eup %661  ;;  %459 = vst [vmem:[%s1176_s20] sm:$0xff] %v443_v3  ;;  %v425_v0 = vmul.f32 %v1153_v41, %v405_v49  ;;  %675 = vrsqrt.f32 %v363_v28  ;;  %v350_v50 = vmax.f32 %v334_v60, 0.0  ;;  %v349_v21 = vmax.f32 %v333_v61, 0.0 }
 0x110   : > { %v664_v63 = vpop.eup %663  ;;  %v446_v18 = vadd.f32 %v1159_v32, %v426_v2  ;;  %v408_v20 = vmul.f32 %v662_v19, %v392_v16  ;;  %v336_v24 = vsub.f32 %v304_v51, %v320_v27  ;;  %v335_v25 = vsub.f32 %v303_v29, %v319_v30 }
 0x111   : > { %v445_v33 = vadd.f32 %v1159_v32, %v425_v0  ;;  %v407_v34 = vmul.f32 %v664_v63, %v391_v17  ;;  %v366_v42 = vadd.f32 1e-12, %v350_v50  ;;  %v365_v38 = vadd.f32 1e-12, %v349_v21 }
 0x112   : > { %v394_v37 = vsub.f32 %v992_v6, %v1097_v23  ;;  %462 = vst [vmem:[%s1176_s20 + $0x18] sm:$0xff] %v446_v18  ;;  %v428_v52 = vmul.f32 %v1153_v41, %v408_v20  ;;  %v352_v43 = vmax.f32 %v336_v24, 0.0  ;;  %v351_v4 = vmax.f32 %v335_v25, 0.0 }
 0x113   : > { %v666_v62 = vpop.eup %665  ;;  %v393_v16 = vsub.f32 %v995_v7, %v1105_v31  ;;  %461 = vst [vmem:[%s1176_s20 + $0x10] sm:$0xff] %v445_v33  ;;  %v427_v27 = vmul.f32 %v1153_v41, %v407_v34  ;;  %677 = vrsqrt.f32 %v366_v42  ;;  %v396_v54 = vsub.f32 %v1000_v8, %v1115_v57 }
 0x114   : > { %v668_v5 = vpop.eup %667  ;;  %v448_v22 = vadd.f32 %v1159_v32, %v428_v52  ;;  %v410_v17 = vmul.f32 %v666_v62, %v394_v37  ;;  %679 = vrsqrt.f32 %v365_v38  ;;  %v368_v6 = vadd.f32 1e-12, %v352_v43 }
 0x115   : > { %v447_v23 = vadd.f32 %v1159_v32, %v427_v27  ;;  %v409_v30 = vmul.f32 %v668_v5, %v393_v16  ;;  %v367_v53 = vadd.f32 1e-12, %v351_v4  ;;  %v395_v39 = vsub.f32 %v1003_v9, %v1117_v58 }
 0x116   : > { %464 = vst [vmem:[%s1176_s20 + $0x28] sm:$0xff] %v448_v22  ;;  %v430_v7 = vmul.f32 %v1153_v41, %v410_v17  ;;  %681 = vrsqrt.f32 %v368_v6  ;;  %v398_v48 = vsub.f32 %v1008_v10, %v1124_v40  ;;  %v397_v58 = vsub.f32 %v1011_v11, %v1131_v26 }
 0x117   : > { %v670_v31 = vpop.eup %669  ;;  %463 = vst [vmem:[%s1176_s20 + $0x20] sm:$0xff] %v447_v23  ;;  %v429_v56 = vmul.f32 %v1153_v41, %v409_v30  ;;  %683 = vrsqrt.f32 %v367_v53  ;;  %v400_v40 = vsub.f32 %v1016_v12, %v1134_v35  ;;  %v399_v2 = vsub.f32 %v1019_v13, %v1137_v36 }
 0x118   : > { %v672_v45 = vpop.eup %671  ;;  %v450_v59 = vadd.f32 %v1159_v32, %v430_v7  ;;  %v412_v1 = vmul.f32 %v670_v31, %v396_v54  ;;  %v402_v50 = vsub.f32 %v1024_v14, %v1144_v55  ;;  %v401_v21 = vsub.f32 %v1027_v15, %v1147_v44 }
 0x119   : > { %v449_v8 = vadd.f32 %v1159_v32, %v429_v56  ;;  %v411_v57 = vmul.f32 %v672_v45, %v395_v39 }
 0x11a   : > { %466 = vst [vmem:[%s1176_s20 + $0x38] sm:$0xff] %v450_v59  ;;  %v432_v28 = vmul.f32 %v1153_v41, %v412_v1 }
 0x11b   : > { %v674_v9 = vpop.eup %673  ;;  %465 = vst [vmem:[%s1176_s20 + $0x30] sm:$0xff] %v449_v8  ;;  %v431_v3 = vmul.f32 %v1153_v41, %v411_v57 }
 0x11c   : > { %v676_v49 = vpop.eup %675  ;;  %v452_v60 = vadd.f32 %v1159_v32, %v432_v28  ;;  %v414_v61 = vmul.f32 %v674_v9, %v398_v48 }
 0x11d   : > { %v451_v46 = vadd.f32 %v1159_v32, %v431_v3  ;;  %v413_v47 = vmul.f32 %v676_v49, %v397_v58 }
 0x11e   : > { %468 = vst [vmem:[%s1176_s20 + $0x48] sm:$0xff] %v452_v60  ;;  %v434_v10 = vmul.f32 %v1153_v41, %v414_v61 }
 0x11f   : > { %467 = vst [vmem:[%s1176_s20 + $0x40] sm:$0xff] %v451_v46  ;;  %v433_v11 = vmul.f32 %v1153_v41, %v413_v47 }
 0x120   : > { %v678_v26 = vpop.eup %677  ;;  %v454_v51 = vadd.f32 %v1159_v32, %v434_v10 }
 0x121   : > { %v680_v29 = vpop.eup %679  ;;  %v453_v19 = vadd.f32 %v1159_v32, %v433_v11  ;;  %v416_v0 = vmul.f32 %v678_v26, %v400_v40 }
 0x122   : > { %470 = vst [vmem:[%s1176_s20 + $0x58] sm:$0xff] %v454_v51  ;;  %v415_v12 = vmul.f32 %v680_v29, %v399_v2 }
 0x123   : > { %v682_v35 = vpop.eup %681  ;;  %469 = vst [vmem:[%s1176_s20 + $0x50] sm:$0xff] %v453_v19  ;;  %v436_v13 = vmul.f32 %v1153_v41, %v416_v0 }
 0x124   : > { %v684_v36 = vpop.eup %683  ;;  %v435_v63 = vmul.f32 %v1153_v41, %v415_v12  ;;  %v418_v18 = vmul.f32 %v682_v35, %v402_v50 }
 0x125   : > { %v456_v14 = vadd.f32 %v1159_v32, %v436_v13  ;;  %v417_v55 = vmul.f32 %v684_v36, %v401_v21 }
 0x126   : > { %v455_v20 = vadd.f32 %v1159_v32, %v435_v63  ;;  %v438_v15 = vmul.f32 %v1153_v41, %v418_v18 }
 0x127   : > { %472 = vst [vmem:[%s1176_s20 + $0x68] sm:$0xff] %v456_v14  ;;  %v437_v44 = vmul.f32 %v1153_v41, %v417_v55 }
 0x128   : > { %471 = vst [vmem:[%s1176_s20 + $0x60] sm:$0xff] %v455_v20  ;;  %v458_v24 = vadd.f32 %v1159_v32, %v438_v15 }
 0x129   : > { %v457_v25 = vadd.f32 %v1159_v32, %v437_v44 }
 0x12a   : > { %474 = vst [vmem:[%s1176_s20 + $0x78] sm:$0xff] %v458_v24 }
 0x12b   : > { %473 = vst [vmem:[%s1176_s20 + $0x70] sm:$0xff] %v457_v25 }
 0x12c   : > { %752 = shalt.err (!%p749_p0)
}
 0x12d   : > { %s753_s3 = scalar_lea.hbm %s1250_s17, 2048  ;;  %s757_s6 = scalar_lea.hbm %s1300_s2, 4096 }
 0x12e   : > { %p754_p4 = scmp.ne.s32.totalorder %s1250_s17, %s753_s3  ;;  %p758_p6 = scmp.lt.s32.totalorder %s1250_s17, %s1300_s2 }
 0x12f   : > { %p759_p13 = scmp.lt.s32.totalorder %s757_s6, %s753_s3 }
 0x130   : > { %p755_p11 = pnand %p754_p4, %p1317_p1 }
 0x131   : > { %p760_p3 = por %p759_p13, %p758_p6 }
 0x132   : > { %p756_p5 = pneg %p755_p11 }
 0x134   : > { %p761_p12 = pnand %p760_p3, %p756_p5 }
 0x136   : > { %764 = shalt.err (!%p761_p12)
}
 0x137   : > { %s814_s24 = smov 128   ;;  %s815_s25 = smov 8  }
 0x138   : > { %598 = dma.vmem_to_hbm [thread:$0]  (%p1317_p1), %s1252_s28, 2048, %s1250_s17, %s476_s13, %s814_s24, %s814_s24, %s815_s25  }
 0x139 PF: > { %s504_s20 = sand.u32 1, %s795_s9   ;;  %p1318_p7 = scmp.ne.s32.totalorder %s1308_s22, 0 }
 0x13a   : > { %p1319_p8 = scmp.ge.s32.totalorder %s807_s12, 2  ;;  %s505_s23 = scalar_lea.sflag [#allocation4], %s504_s20 }
 0x13c   : > { %p609_p9 = pnand %p1319_p8, %p1318_p7 }
 0x13e   : > { %p610_p10 = pneg %p609_p9 }
 0x140   : > { %790 = dma.done.wait (%p610_p10), %s505_s23, 2048  }
 0x141   : > { %792 = vsyncadd (%p610_p10), %s505_s23, 4294965248  ;;  %p16_p2 = scmp.ge.s32.totalorder %s856_s15, 4   ;;  %s1320_s9 = smov %s799_s10 }
 0x142   : > { %s1321_s10 = smov %s803_s11  ;;  %s1322_s11 = smov %s868_s18 }
 0x143   : > { %s1323_s12 = smov %s856_s15  ;;  %18 = sbr.rel (!%p16_p2) target bundleno = 6 (0x6), region = 77 }
 0x148   :  { %510 = vsyncpa [#allocation3], 1 }
 0x149   :  { %512 = vsyncpa [#allocation3 + $0x1], 1 }
 0x14a   :  { %513 = vsyncpa [#allocation6], 1 }
 0x14b   :  { %514 = vsyncpa [#allocation4], 1 }
 0x14c   :  { %516 = vsyncpa [#allocation4 + $0x1], 1 }

</bundles_post_ra>
